<compile_context>
chip_gen: v5e
topology: v5e:2x2
jax: 0.10.0
libtpu: 0.0.40
codegen_flags: <defaults>
</compile_context>

<pallas_src>
import numpy as np

import jax
import jax.numpy as jnp
from jax.experimental import pallas as pl
from jax.experimental.pallas import tpu as pltpu


# --------------------------------------------------------------------------- fused kernel

def _fedcon_mnist_kernel(lhs1_ref, t1_ref, t2_ref, w1f_ref, w2t_ref, w3t_ref,
                         bias_ref, out_ref):
    """Entire simple-cnn-mnist forward; 9 MXU dots, no in-kernel reshapes / scratch buffers.

    lhs1_ref : (1, 4, 6*bt, 140) conv1 im2col.  dim1 = p*2+par (p = pool row offset,
               par = pool1 row parity), row = u*bt + b (pool1 row ph1 = 2u+par), col = i*28 + w.
    t1_ref   : (140, 144) conv1 Toeplitz, col = q*72 + pw1*6 + ci  (q = pool col offset)
    t2_ref   : (360, 128) conv2 Toeplitz, row = i*72 + pw1*6 + ci, col = q*64 + pw2*16 + co
    w1f_ref  : (256, 120) fc1 weight permuted to row = ph2*64 + pw2*16 + co
    w2t_ref  : (120, 84)  fc2 weight (transposed)
    w3t_ref  : (84, NC)   l3 weight (transposed)
    bias_ref : (8, 128) f32; rows: conv1(72) conv2(64) fc1(120) fc2(84) l3(NC)
    out_ref  : (bt, OUTW) f32; [:, :84] = h, [:, 84:84+NC] = y, rest zero
    """
    f32 = jnp.float32
    mxu = t1_ref.dtype
    bt = lhs1_ref.shape[2] // 6
    nc = w3t_ref.shape[1]

    # ---- conv1 (1->6, 5x5) + ReLU + 2x2 max-pool : 4 dots, M=6*bt, K=140, N=144 ------------
    t1 = t1_ref[...]
    b1 = bias_ref[0:1, 0:72]
    pool1 = []
    for par in range(2):                                          # pool1 row parity
        d0 = jnp.dot(lhs1_ref[0, par], t1, preferred_element_type=f32)        # p = 0
        d1 = jnp.dot(lhs1_ref[0, 2 + par], t1, preferred_element_type=f32)    # p = 1
        m = jnp.maximum(d0, d1)                                   # max over pool row offset p
        m = jnp.maximum(m[:, 0:72], m[:, 72:144])                 # max over pool col offset q
        # bias + ReLU commute with the max (bias constant over the pool window)
        pool1.append(jnp.maximum(m + b1, 0.0).astype(mxu))        # (6*bt, 72), row = u*bt + b

    # ---- conv2 (6->16, 5x5) + ReLU + 2x2 max-pool : 2 dots, M=4*bt, K=360, N=128 -----------
    t2 = t2_ref[...]
    b2 = bias_ref[1:2, 0:64]
    d2 = []
    for p in range(2):                                            # pool2 row offset
        # im2col over the conv kernel row i: contiguous row slices of the parity-split pool1
        lhs2 = jnp.concatenate(
            [pool1[(p + i) % 2][((p + i) // 2) * bt:((p + i) // 2 + 4) * bt, :]
             for i in range(5)], axis=1)                          # (4*bt, 360), row = ph2*bt + b
        d2.append(jnp.dot(lhs2, t2, preferred_element_type=f32))  # (4*bt, 128)
    m2 = jnp.maximum(d2[0], d2[1])                                # max over pool row offset p
    m2 = jnp.maximum(m2[:, 0:64], m2[:, 64:128])                  # max over pool col offset q
    pool2 = jnp.maximum(m2 + b2, 0.0)                             # (4*bt, 64), col = pw2*16+co

    # ---- fc1 -> ReLU -> fc2 -> ReLU (= h) -> l3 (= y) : 3 dots -----------------------------
    hflat = jnp.concatenate([pool2[ph * bt:(ph + 1) * bt, :] for ph in range(4)],
                            axis=1).astype(mxu)                   # (bt, 256), col = ph2*64+pw2*16+co
    a1 = jnp.maximum(jnp.dot(hflat, w1f_ref[...], preferred_element_type=f32)
                     + bias_ref[2:3, 0:120], 0.0)                 # (bt, 120)
    h = jnp.maximum(jnp.dot(a1.astype(mxu), w2t_ref[...], preferred_element_type=f32)
                    + bias_ref[3:4, 0:84], 0.0)                   # (bt, 84)
    y = (jnp.dot(h.astype(mxu), w3t_ref[...], preferred_element_type=f32)
         + bias_ref[4:5, 0:nc])                                   # (bt, NC)

    # ---- single lane-dense packed output (one unmasked store / one writeback stream) -------
    pad = out_ref.shape[1] - 84 - nc
    pieces = [h, y]
    if pad:
        pieces.append(jnp.zeros((bt, pad), f32))
    out_ref[...] = jnp.concatenate(pieces, axis=1)


# --------------------------------------------------------------------------- weight prep

def prepare_params(params, mxu_dtype=jnp.bfloat16):
    """One-time weight preparation.

    Builds Toeplitz conv matrices with the conv kernel rows folded into K and the pool column
    offset folded into N, the flatten-order-permuted fc1 weight, transposed fc weights, and a
    single (8,128) bias block.  Matmul operands are pre-cast to `mxu_dtype` (bf16 by default);
    all elementwise math in the kernel stays f32.
    """
    f32 = jnp.float32
    w1 = jnp.asarray(params["conv1_w"], f32)      # (6, 1, 5, 5)
    b1 = jnp.asarray(params["conv1_b"], f32)      # (6,)
    w2 = jnp.asarray(params["conv2_w"], f32)      # (16, 6, 5, 5)
    b2 = jnp.asarray(params["conv2_b"], f32)      # (16,)
    fc1_w = jnp.asarray(params["fc1_w"], f32)     # (120, 256)
    fc1_b = jnp.asarray(params["fc1_b"], f32)
    fc2_w = jnp.asarray(params["fc2_w"], f32)     # (84, 120)
    fc2_b = jnp.asarray(params["fc2_b"], f32)
    l3_w = jnp.asarray(params["l3_w"], f32)       # (NC, 84)
    l3_b = jnp.asarray(params["l3_b"], f32)
    n_classes = l3_w.shape[0]
    assert n_classes <= 128  # TODO(synk): widen the bias block / output packing for n_classes > 128

    # conv1 Toeplitz:  t1[i*28 + w, q*72 + pw1*6 + ci] = w1[ci, 0, i, w - 2*pw1 - q]
    m1 = np.zeros((2, 28, 12, 5), np.float32)
    for q in range(2):
        for pw in range(12):
            for j in range(5):
                m1[q, 2 * pw + q + j, pw, j] = 1.0
    t1 = jnp.einsum('qwpj,cij->iwqpc', jnp.asarray(m1), w1[:, 0]).reshape(140, 144)

    # conv2 Toeplitz:  t2[i*72 + pw1*6 + ci, q*64 + pw2*16 + co] = w2[co, ci, i, pw1 - 2*pw2 - q]
    m2 = np.zeros((2, 12, 4, 5), np.float32)
    for q in range(2):
        for pw2 in range(4):
            for j in range(5):
                m2[q, 2 * pw2 + q + j, pw2, j] = 1.0
    t2 = jnp.einsum('qPpj,ocij->iPcqpo', jnp.asarray(m2), w2).reshape(360, 128)

    # fc1 weight permuted: kernel flatten index ph2*64 + pw2*16 + co,
    # PyTorch flatten index co*16 + ph2*4 + pw2.
    w1f = jnp.transpose(fc1_w.reshape(120, 16, 4, 4), (2, 3, 1, 0)).reshape(256, 120)

    # All biases merged into one (8,128) constant block (one operand / one DMA stream).
    bias = jnp.zeros((8, 128), f32)
    bias = bias.at[0, 0:72].set(jnp.tile(b1, 12))
    bias = bias.at[1, 0:64].set(jnp.tile(b2, 4))
    bias = bias.at[2, 0:120].set(fc1_b)
    bias = bias.at[3, 0:84].set(fc2_b)
    bias = bias.at[4, 0:n_classes].set(l3_b)

    return {
        "t1": t1.astype(mxu_dtype),
        "t2": t2.astype(mxu_dtype),
        "w1f": w1f.astype(mxu_dtype),
        "w2t": fc2_w.T.astype(mxu_dtype),
        "w3t": l3_w.T.astype(mxu_dtype),
        "bias": bias,
    }


# --------------------------------------------------------------------------- forward

def _build_conv1_im2col(x_nchw, bt, dtype):
    """Wrapper-side im2col for conv1, pre-split by pool-row offset p and pool1-row parity par
    so every in-kernel pool-max and conv2 im2col slice is a contiguous static slice."""
    B = x_nchw.shape[0]
    G = B // bt
    x2d = x_nchw[:, 0].astype(jnp.float32)                    # (B, 28, 28)
    p_ = np.arange(2).reshape(2, 1, 1, 1)                     # pool row offset
    par_ = np.arange(2).reshape(1, 2, 1, 1)                   # pool1 row parity
    u_ = np.arange(6).reshape(1, 1, 6, 1)                     # pool1 row = 2u + par
    i_ = np.arange(5).reshape(1, 1, 1, 5)                     # conv kernel row
    rows = 4 * u_ + 2 * par_ + p_ + i_                        # (2, 2, 6, 5) input row index
    win = x2d[:, rows, :]                                     # (B, 2, 2, 6, 5, 28)
    win = jnp.transpose(win, (1, 2, 3, 0, 4, 5))              # (p, par, u, B, i, w)
    win = win.reshape(2, 2, 6, G, bt, 140)                    # B -> (tile, local)
    win = jnp.transpose(win, (3, 0, 1, 2, 4, 5))              # (G, p, par, u, bt, 140)
    return win.reshape(G, 4, 6 * bt, 140).astype(dtype)


def model_fedcon_noheader_forward(x_nchw, prep, *, batch_tile=None):
    """Returns (h, h, y) exactly like ModelFedCon_noheader.forward (simple-cnn-mnist)."""
    B = x_nchw.shape[0]
    assert x_nchw.shape[1:] == (1, 28, 28), "simple-cnn-mnist expects (B, 1, 28, 28) input"
    n_classes = prep["w3t"].shape[1]
    out_w = max(128, ((84 + n_classes + 127) // 128) * 128)   # lane-dense packed [h | y]

    if batch_tile is None:
        # Single grid step unless the batch is large enough to shard across v7x's two TCs.
        batch_tile = B // 2 if (B >= 16 and B % 16 == 0) else B
    bt = batch_tile
    assert B % bt == 0 and (bt == B or bt % 8 == 0), "batch tile must be B or a multiple of 8"
    G = B // bt

    mxu = prep["t1"].dtype
    lhs1 = _build_conv1_im2col(x_nchw, bt, mxu)               # (G, 4, 6*bt, 140)

    weights = (prep["t1"], prep["t2"], prep["w1f"], prep["w2t"], prep["w3t"], prep["bias"])

    in_specs = [pl.BlockSpec((1, 4, 6 * bt, 140), lambda g: (g, 0, 0, 0))]
    in_specs += [pl.BlockSpec(w.shape, lambda g, nd=w.ndim: (0,) * nd) for w in weights]
    out_specs = pl.BlockSpec((bt, out_w), lambda g: (g, 0))

    out = pl.pallas_call(
        _fedcon_mnist_kernel,
        out_shape=jax.ShapeDtypeStruct((B, out_w), jnp.float32),
        grid=(G,),
        in_specs=in_specs,
        out_specs=out_specs,
        compiler_params=pltpu.CompilerParams(
            dimension_semantics=("parallel",)),               # shards batch tiles on v7x
    )(lhs1, *weights)

    h = out[:, :84]
    y = out[:, 84:84 + n_classes]
    if B == 1:
        # mirror torch .squeeze(): batch dim of size 1 is dropped
        h = h[0]
        y = y[0]
    return h, h, y


# --------------------------------------------------------------------------- params & reference

def init_params(key, n_classes=10):
    ks = jax.random.split(key, 10)
    s = 0.1
    return {
        "conv1_w": s * jax.random.normal(ks[0], (6, 1, 5, 5), jnp.float32),
        "conv1_b": s * jax.random.normal(ks[1], (6,), jnp.float32),
        "conv2_w": s * jax.random.normal(ks[2], (16, 6, 5, 5), jnp.float32),
        "conv2_b": s * jax.random.normal(ks[3], (16,), jnp.float32),
        "fc1_w":   s * jax.random.normal(ks[4], (120, 16 * 4 * 4), jnp.float32),
        "fc1_b":   s * jax.random.normal(ks[5], (120,), jnp.float32),
        "fc2_w":   s * jax.random.normal(ks[6], (84, 120), jnp.float32),
        "fc2_b":   s * jax.random.normal(ks[7], (84,), jnp.float32),
        "l3_w":    s * jax.random.normal(ks[8], (n_classes, 84), jnp.float32),
        "l3_b":    s * jax.random.normal(ks[9], (n_classes,), jnp.float32),
    }


def reference_forward(x_nchw, params):
    """Pure-JAX (non-Pallas) reference matching the PyTorch module semantics."""
    hi = jax.lax.Precision.HIGHEST
    B = x_nchw.shape[0]
    x = x_nchw[:, 0]                                     # (B, 28, 28)
    w1 = params["conv1_w"][:, 0]
    c1 = params["conv1_b"][None, :, None, None] + sum(
        x[:, None, i:i + 24, j:j + 24] * w1[None, :, i, j, None, None]
        for i in range(5) for j in range(5))
    p1 = jnp.maximum(c1, 0.0).reshape(B, 6, 12, 2, 12, 2).max(axis=(3, 5))
    w2 = params["conv2_w"]
    c2 = params["conv2_b"][None, :, None, None] + sum(
        jnp.einsum('bchw,oc->bohw', p1[:, :, i:i + 8, j:j + 8], w2[:, :, i, j],
                   precision=hi)
        for i in range(5) for j in range(5))
    p2 = jnp.maximum(c2, 0.0).reshape(B, 16, 4, 2, 4, 2).max(axis=(3, 5))
    flat = p2.reshape(B, 256)
    f1 = jnp.maximum(jnp.dot(flat, params["fc1_w"].T, precision=hi) + params["fc1_b"], 0.0)
    h = jnp.maximum(jnp.dot(f1, params["fc2_w"].T, precision=hi) + params["fc2_b"], 0.0)
    y = jnp.dot(h, params["l3_w"].T, precision=hi) + params["l3_b"]
    return h, y


# --------------------------------------------------------------------------- main

if __name__ == "__main__":
    key = jax.random.PRNGKey(0)
    k_x, k_p = jax.random.split(key)
    B, n_classes = 2, 10
    x = jax.random.normal(k_x, (B, 1, 28, 28), jnp.float32)     # MNIST-style NCHW input
    params = init_params(k_p, n_classes=n_classes)

    # One-time weight preparation (bf16 MXU operands by default; pass jnp.float32 for exact f32).
    prep = prepare_params(params, mxu_dtype=jnp.bfloat16)

    fwd = jax.jit(model_fedcon_noheader_forward)
    h1, h2, y = fwd(x, prep)
    jax.block_until_ready((h1, h2, y))

    assert h1.shape == (B, 84) and h2.shape == (B, 84) and y.shape == (B, n_classes)
    assert bool(jnp.all(h1 == h2))

    # Numerical check against a plain-JAX reference of the PyTorch module
    # (tolerance accounts for the one-time bf16 rounding of MXU operands).
    h_ref, y_ref = jax.jit(reference_forward)(x, params)
    np.testing.assert_allclose(np.asarray(h1), np.asarray(h_ref), rtol=5e-2, atol=5e-2)
    np.testing.assert_allclose(np.asarray(y), np.asarray(y_ref), rtol=5e-2, atol=5e-2)

    print("KERNEL_OK")
</pallas_src>

<mosaic_0001>
module attributes {stable_mosaic.version = 11 : i64} {
  func.func @_fedcon_mnist_kernel(%arg0: i32, %arg1: memref<1x4x12x140xbf16, #tpu.memory_space<vmem>>, %arg2: memref<140x144xbf16, #tpu.memory_space<vmem>>, %arg3: memref<360x128xbf16, #tpu.memory_space<vmem>>, %arg4: memref<256x120xbf16, #tpu.memory_space<vmem>>, %arg5: memref<120x84xbf16, #tpu.memory_space<vmem>>, %arg6: memref<84x10xbf16, #tpu.memory_space<vmem>>, %arg7: memref<8x128xf32, #tpu.memory_space<vmem>>, %arg8: memref<2x128xf32, #tpu.memory_space<vmem>>) attributes {dimension_semantics = [#tpu.dimension_semantics<parallel>], iteration_bounds = array<i64: 1>, scalar_prefetch = 0 : i64, scratch_operands = 0 : i64, tpu.core_type = #tpu.core_type<tc>, window_params = [{transform_indices = @transform_0, window_bounds = array<i64: 1, 4, 12, 140>}, {pipeline_mode = #tpu.pipeline_mode<synchronous>, transform_indices = @transform_1, window_bounds = array<i64: 140, 144>}, {pipeline_mode = #tpu.pipeline_mode<synchronous>, transform_indices = @transform_2, window_bounds = array<i64: 360, 128>}, {pipeline_mode = #tpu.pipeline_mode<synchronous>, transform_indices = @transform_3, window_bounds = array<i64: 256, 120>}, {pipeline_mode = #tpu.pipeline_mode<synchronous>, transform_indices = @transform_4, window_bounds = array<i64: 120, 84>}, {pipeline_mode = #tpu.pipeline_mode<synchronous>, transform_indices = @transform_5, window_bounds = array<i64: 84, 10>}, {pipeline_mode = #tpu.pipeline_mode<synchronous>, transform_indices = @transform_6, window_bounds = array<i64: 8, 128>}, {transform_indices = @transform_7, window_bounds = array<i64: 2, 128>}]} {
    %c0 = arith.constant 0 : index
    %c0_0 = arith.constant 0 : index
    %0 = vector.load %arg2[%c0, %c0_0] : memref<140x144xbf16, #tpu.memory_space<vmem>>, vector<140x144xbf16>
    %c0_1 = arith.constant 0 : index
    %c0_2 = arith.constant 0 : index
    %1 = vector.load %arg7[%c0_1, %c0_2] : memref<8x128xf32, #tpu.memory_space<vmem>>, vector<1x72xf32>
    %c0_3 = arith.constant 0 : index
    %c0_4 = arith.constant 0 : index
    %c0_5 = arith.constant 0 : index
    %c0_6 = arith.constant 0 : index
    %2 = vector.load %arg1[%c0_3, %c0_4, %c0_5, %c0_6] : memref<1x4x12x140xbf16, #tpu.memory_space<vmem>>, vector<1x1x12x140xbf16>
    %3 = vector.shape_cast %2 : vector<1x1x12x140xbf16> to vector<12x140xbf16>
    %cst = arith.constant dense<0.000000e+00> : vector<12x144xf32>
    %4 = tpu.matmul %3, %0, %cst {dimension_numbers = #tpu.dot_dimension_numbers<[1], [0], [0], [1], [0, 0, 1, 1], [], []>} : vector<12x140xbf16>, vector<140x144xbf16>, vector<12x144xf32> -> vector<12x144xf32>
    %c0_7 = arith.constant 0 : index
    %c2 = arith.constant 2 : index
    %c0_8 = arith.constant 0 : index
    %c0_9 = arith.constant 0 : index
    %5 = vector.load %arg1[%c0_7, %c2, %c0_8, %c0_9] : memref<1x4x12x140xbf16, #tpu.memory_space<vmem>>, vector<1x1x12x140xbf16>
    %6 = vector.shape_cast %5 : vector<1x1x12x140xbf16> to vector<12x140xbf16>
    %cst_10 = arith.constant dense<0.000000e+00> : vector<12x144xf32>
    %7 = tpu.matmul %6, %0, %cst_10 {dimension_numbers = #tpu.dot_dimension_numbers<[1], [0], [0], [1], [0, 0, 1, 1], [], []>} : vector<12x140xbf16>, vector<140x144xbf16>, vector<12x144xf32> -> vector<12x144xf32>
    %8 = arith.maximumf %4, %7 : vector<12x144xf32>
    %9 = vector.extract_strided_slice %8 {offsets = [0, 0], sizes = [12, 72], strides = [1, 1]} : vector<12x144xf32> to vector<12x72xf32>
    %10 = vector.extract_strided_slice %8 {offsets = [0, 72], sizes = [12, 72], strides = [1, 1]} : vector<12x144xf32> to vector<12x72xf32>
    %11 = arith.maximumf %9, %10 : vector<12x72xf32>
    %12 = vector.broadcast %1 : vector<1x72xf32> to vector<12x72xf32>
    %13 = arith.addf %11, %12 : vector<12x72xf32>
    %cst_11 = arith.constant 0.000000e+00 : f32
    %14 = vector.broadcast %cst_11 : f32 to vector<12x72xf32>
    %15 = arith.maximumf %13, %14 : vector<12x72xf32>
    %16 = arith.truncf %15 : vector<12x72xf32> to vector<12x72xbf16>
    %c0_12 = arith.constant 0 : index
    %c1 = arith.constant 1 : index
    %c0_13 = arith.constant 0 : index
    %c0_14 = arith.constant 0 : index
    %17 = vector.load %arg1[%c0_12, %c1, %c0_13, %c0_14] : memref<1x4x12x140xbf16, #tpu.memory_space<vmem>>, vector<1x1x12x140xbf16>
    %18 = vector.shape_cast %17 : vector<1x1x12x140xbf16> to vector<12x140xbf16>
    %cst_15 = arith.constant dense<0.000000e+00> : vector<12x144xf32>
    %19 = tpu.matmul %18, %0, %cst_15 {dimension_numbers = #tpu.dot_dimension_numbers<[1], [0], [0], [1], [0, 0, 1, 1], [], []>} : vector<12x140xbf16>, vector<140x144xbf16>, vector<12x144xf32> -> vector<12x144xf32>
    %c0_16 = arith.constant 0 : index
    %c3 = arith.constant 3 : index
    %c0_17 = arith.constant 0 : index
    %c0_18 = arith.constant 0 : index
    %20 = vector.load %arg1[%c0_16, %c3, %c0_17, %c0_18] : memref<1x4x12x140xbf16, #tpu.memory_space<vmem>>, vector<1x1x12x140xbf16>
    %21 = vector.shape_cast %20 : vector<1x1x12x140xbf16> to vector<12x140xbf16>
    %cst_19 = arith.constant dense<0.000000e+00> : vector<12x144xf32>
    %22 = tpu.matmul %21, %0, %cst_19 {dimension_numbers = #tpu.dot_dimension_numbers<[1], [0], [0], [1], [0, 0, 1, 1], [], []>} : vector<12x140xbf16>, vector<140x144xbf16>, vector<12x144xf32> -> vector<12x144xf32>
    %23 = arith.maximumf %19, %22 : vector<12x144xf32>
    %24 = vector.extract_strided_slice %23 {offsets = [0, 0], sizes = [12, 72], strides = [1, 1]} : vector<12x144xf32> to vector<12x72xf32>
    %25 = vector.extract_strided_slice %23 {offsets = [0, 72], sizes = [12, 72], strides = [1, 1]} : vector<12x144xf32> to vector<12x72xf32>
    %26 = arith.maximumf %24, %25 : vector<12x72xf32>
    %27 = vector.broadcast %1 : vector<1x72xf32> to vector<12x72xf32>
    %28 = arith.addf %26, %27 : vector<12x72xf32>
    %cst_20 = arith.constant 0.000000e+00 : f32
    %29 = vector.broadcast %cst_20 : f32 to vector<12x72xf32>
    %30 = arith.maximumf %28, %29 : vector<12x72xf32>
    %31 = arith.truncf %30 : vector<12x72xf32> to vector<12x72xbf16>
    %c0_21 = arith.constant 0 : index
    %c0_22 = arith.constant 0 : index
    %32 = vector.load %arg3[%c0_21, %c0_22] : memref<360x128xbf16, #tpu.memory_space<vmem>>, vector<360x128xbf16>
    %c1_23 = arith.constant 1 : index
    %c0_24 = arith.constant 0 : index
    %33 = vector.load %arg7[%c1_23, %c0_24] : memref<8x128xf32, #tpu.memory_space<vmem>>, vector<1x64xf32>
    %34 = vector.extract_strided_slice %16 {offsets = [0, 0], sizes = [8, 72], strides = [1, 1]} : vector<12x72xbf16> to vector<8x72xbf16>
    %35 = vector.extract_strided_slice %31 {offsets = [0, 0], sizes = [8, 72], strides = [1, 1]} : vector<12x72xbf16> to vector<8x72xbf16>
    %36 = vector.extract_strided_slice %16 {offsets = [2, 0], sizes = [8, 72], strides = [1, 1]} : vector<12x72xbf16> to vector<8x72xbf16>
    %37 = vector.extract_strided_slice %31 {offsets = [2, 0], sizes = [8, 72], strides = [1, 1]} : vector<12x72xbf16> to vector<8x72xbf16>
    %38 = vector.extract_strided_slice %16 {offsets = [4, 0], sizes = [8, 72], strides = [1, 1]} : vector<12x72xbf16> to vector<8x72xbf16>
    %39 = tpu.concatenate %34, %35, %36, %37, %38 in 1 : vector<8x72xbf16>, vector<8x72xbf16>, vector<8x72xbf16>, vector<8x72xbf16>, vector<8x72xbf16> -> vector<8x360xbf16>
    %cst_25 = arith.constant dense<0.000000e+00> : vector<8x128xf32>
    %40 = tpu.matmul %39, %32, %cst_25 {dimension_numbers = #tpu.dot_dimension_numbers<[1], [0], [0], [1], [0, 0, 1, 1], [], []>} : vector<8x360xbf16>, vector<360x128xbf16>, vector<8x128xf32> -> vector<8x128xf32>
    %41 = vector.extract_strided_slice %31 {offsets = [0, 0], sizes = [8, 72], strides = [1, 1]} : vector<12x72xbf16> to vector<8x72xbf16>
    %42 = vector.extract_strided_slice %16 {offsets = [2, 0], sizes = [8, 72], strides = [1, 1]} : vector<12x72xbf16> to vector<8x72xbf16>
    %43 = vector.extract_strided_slice %31 {offsets = [2, 0], sizes = [8, 72], strides = [1, 1]} : vector<12x72xbf16> to vector<8x72xbf16>
    %44 = vector.extract_strided_slice %16 {offsets = [4, 0], sizes = [8, 72], strides = [1, 1]} : vector<12x72xbf16> to vector<8x72xbf16>
    %45 = vector.extract_strided_slice %31 {offsets = [4, 0], sizes = [8, 72], strides = [1, 1]} : vector<12x72xbf16> to vector<8x72xbf16>
    %46 = tpu.concatenate %41, %42, %43, %44, %45 in 1 : vector<8x72xbf16>, vector<8x72xbf16>, vector<8x72xbf16>, vector<8x72xbf16>, vector<8x72xbf16> -> vector<8x360xbf16>
    %cst_26 = arith.constant dense<0.000000e+00> : vector<8x128xf32>
    %47 = tpu.matmul %46, %32, %cst_26 {dimension_numbers = #tpu.dot_dimension_numbers<[1], [0], [0], [1], [0, 0, 1, 1], [], []>} : vector<8x360xbf16>, vector<360x128xbf16>, vector<8x128xf32> -> vector<8x128xf32>
    %48 = arith.maximumf %40, %47 : vector<8x128xf32>
    %49 = vector.extract_strided_slice %48 {offsets = [0, 0], sizes = [8, 64], strides = [1, 1]} : vector<8x128xf32> to vector<8x64xf32>
    %50 = vector.extract_strided_slice %48 {offsets = [0, 64], sizes = [8, 64], strides = [1, 1]} : vector<8x128xf32> to vector<8x64xf32>
    %51 = arith.maximumf %49, %50 : vector<8x64xf32>
    %52 = vector.broadcast %33 : vector<1x64xf32> to vector<8x64xf32>
    %53 = arith.addf %51, %52 : vector<8x64xf32>
    %cst_27 = arith.constant 0.000000e+00 : f32
    %54 = vector.broadcast %cst_27 : f32 to vector<8x64xf32>
    %55 = arith.maximumf %53, %54 : vector<8x64xf32>
    %56 = vector.extract_strided_slice %55 {offsets = [0, 0], sizes = [2, 64], strides = [1, 1]} : vector<8x64xf32> to vector<2x64xf32>
    %57 = vector.extract_strided_slice %55 {offsets = [2, 0], sizes = [2, 64], strides = [1, 1]} : vector<8x64xf32> to vector<2x64xf32>
    %58 = vector.extract_strided_slice %55 {offsets = [4, 0], sizes = [2, 64], strides = [1, 1]} : vector<8x64xf32> to vector<2x64xf32>
    %59 = vector.extract_strided_slice %55 {offsets = [6, 0], sizes = [2, 64], strides = [1, 1]} : vector<8x64xf32> to vector<2x64xf32>
    %60 = tpu.concatenate %56, %57, %58, %59 in 1 : vector<2x64xf32>, vector<2x64xf32>, vector<2x64xf32>, vector<2x64xf32> -> vector<2x256xf32>
    %61 = arith.truncf %60 : vector<2x256xf32> to vector<2x256xbf16>
    %c0_28 = arith.constant 0 : index
    %c0_29 = arith.constant 0 : index
    %62 = vector.load %arg4[%c0_28, %c0_29] : memref<256x120xbf16, #tpu.memory_space<vmem>>, vector<256x120xbf16>
    %cst_30 = arith.constant dense<0.000000e+00> : vector<2x120xf32>
    %63 = tpu.matmul %61, %62, %cst_30 {dimension_numbers = #tpu.dot_dimension_numbers<[1], [0], [0], [1], [0, 0, 1, 1], [], []>} : vector<2x256xbf16>, vector<256x120xbf16>, vector<2x120xf32> -> vector<2x120xf32>
    %c2_31 = arith.constant 2 : index
    %c0_32 = arith.constant 0 : index
    %64 = vector.load %arg7[%c2_31, %c0_32] : memref<8x128xf32, #tpu.memory_space<vmem>>, vector<1x120xf32>
    %65 = vector.broadcast %64 : vector<1x120xf32> to vector<2x120xf32>
    %66 = arith.addf %63, %65 : vector<2x120xf32>
    %cst_33 = arith.constant 0.000000e+00 : f32
    %67 = vector.broadcast %cst_33 : f32 to vector<2x120xf32>
    %68 = arith.maximumf %66, %67 : vector<2x120xf32>
    %69 = arith.truncf %68 : vector<2x120xf32> to vector<2x120xbf16>
    %c0_34 = arith.constant 0 : index
    %c0_35 = arith.constant 0 : index
    %70 = vector.load %arg5[%c0_34, %c0_35] : memref<120x84xbf16, #tpu.memory_space<vmem>>, vector<120x84xbf16>
    %cst_36 = arith.constant dense<0.000000e+00> : vector<2x84xf32>
    %71 = tpu.matmul %69, %70, %cst_36 {dimension_numbers = #tpu.dot_dimension_numbers<[1], [0], [0], [1], [0, 0, 1, 1], [], []>} : vector<2x120xbf16>, vector<120x84xbf16>, vector<2x84xf32> -> vector<2x84xf32>
    %c3_37 = arith.constant 3 : index
    %c0_38 = arith.constant 0 : index
    %72 = vector.load %arg7[%c3_37, %c0_38] : memref<8x128xf32, #tpu.memory_space<vmem>>, vector<1x84xf32>
    %73 = vector.broadcast %72 : vector<1x84xf32> to vector<2x84xf32>
    %74 = arith.addf %71, %73 : vector<2x84xf32>
    %cst_39 = arith.constant 0.000000e+00 : f32
    %75 = vector.broadcast %cst_39 : f32 to vector<2x84xf32>
    %76 = arith.maximumf %74, %75 : vector<2x84xf32>
    %77 = arith.truncf %76 : vector<2x84xf32> to vector<2x84xbf16>
    %c0_40 = arith.constant 0 : index
    %c0_41 = arith.constant 0 : index
    %78 = vector.load %arg6[%c0_40, %c0_41] : memref<84x10xbf16, #tpu.memory_space<vmem>>, vector<84x10xbf16>
    %cst_42 = arith.constant dense<0.000000e+00> : vector<2x10xf32>
    %79 = tpu.matmul %77, %78, %cst_42 {dimension_numbers = #tpu.dot_dimension_numbers<[1], [0], [0], [1], [0, 0, 1, 1], [], []>} : vector<2x84xbf16>, vector<84x10xbf16>, vector<2x10xf32> -> vector<2x10xf32>
    %c4 = arith.constant 4 : index
    %c0_43 = arith.constant 0 : index
    %80 = vector.load %arg7[%c4, %c0_43] : memref<8x128xf32, #tpu.memory_space<vmem>>, vector<1x10xf32>
    %81 = vector.broadcast %80 : vector<1x10xf32> to vector<2x10xf32>
    %82 = arith.addf %79, %81 : vector<2x10xf32>
    %cst_44 = arith.constant 0.000000e+00 : f32
    %83 = vector.broadcast %cst_44 : f32 to vector<2x34xf32>
    %84 = tpu.concatenate %76, %82, %83 in 1 : vector<2x84xf32>, vector<2x10xf32>, vector<2x34xf32> -> vector<2x128xf32>
    %c0_45 = arith.constant 0 : index
    %c0_46 = arith.constant 0 : index
    %85 = vector.load %arg8[%c0_45, %c0_46] : memref<2x128xf32, #tpu.memory_space<vmem>>, vector<2x128xf32>
    tpu.vector_store %arg8[%c0_45, %c0_46], %84 {strides = array<i32>} : memref<2x128xf32, #tpu.memory_space<vmem>>, vector<2x128xf32>,
    return
  }
  func.func @transform_0(%arg0: i32) -> (i32, i32, i32, i32) {
    %c0_i32 = arith.constant 0 : i32
    %c0_i32_0 = arith.constant 0 : i32
    %c0_i32_1 = arith.constant 0 : i32
    %c0_i32_2 = arith.constant 0 : i32
    return %arg0, %c0_i32, %c0_i32_0, %c0_i32_1 : i32, i32, i32, i32
  }
  func.func @transform_1(%arg0: i32) -> (i32, i32) {
    %c0_i32 = arith.constant 0 : i32
    %c0_i32_0 = arith.constant 0 : i32
    %c0_i32_1 = arith.constant 0 : i32
    return %c0_i32, %c0_i32_0 : i32, i32
  }
  func.func @transform_2(%arg0: i32) -> (i32, i32) {
    %c0_i32 = arith.constant 0 : i32
    %c0_i32_0 = arith.constant 0 : i32
    %c0_i32_1 = arith.constant 0 : i32
    return %c0_i32, %c0_i32_0 : i32, i32
  }
  func.func @transform_3(%arg0: i32) -> (i32, i32) {
    %c0_i32 = arith.constant 0 : i32
    %c0_i32_0 = arith.constant 0 : i32
    %c0_i32_1 = arith.constant 0 : i32
    return %c0_i32, %c0_i32_0 : i32, i32
  }
  func.func @transform_4(%arg0: i32) -> (i32, i32) {
    %c0_i32 = arith.constant 0 : i32
    %c0_i32_0 = arith.constant 0 : i32
    %c0_i32_1 = arith.constant 0 : i32
    return %c0_i32, %c0_i32_0 : i32, i32
  }
  func.func @transform_5(%arg0: i32) -> (i32, i32) {
    %c0_i32 = arith.constant 0 : i32
    %c0_i32_0 = arith.constant 0 : i32
    %c0_i32_1 = arith.constant 0 : i32
    return %c0_i32, %c0_i32_0 : i32, i32
  }
  func.func @transform_6(%arg0: i32) -> (i32, i32) {
    %c0_i32 = arith.constant 0 : i32
    %c0_i32_0 = arith.constant 0 : i32
    %c0_i32_1 = arith.constant 0 : i32
    return %c0_i32, %c0_i32_0 : i32, i32
  }
  func.func @transform_7(%arg0: i32) -> (i32, i32) {
    %c0_i32 = arith.constant 0 : i32
    %c0_i32_0 = arith.constant 0 : i32
    return %arg0, %c0_i32 : i32, i32
  }
}

</mosaic_0001>

<bundles_post_ra>
// kernel: model_fedcon_noheader_forward.1
= control target key start
LH: loop header
LB: loop body
LE: loop exit
PB: predicated region body
PF: predicated region fallthrough
CT: control target
= control target key end

     0   :  { %vm149_vm0 = vcmask 1045504   ;;  %vm145_vm1 = vcmask 97280   ;;  %vm299_vm2 = vcmask 457728   ;;  %s1570_s14 = smov 16   ;;  %s1571_s15 = smov 72   ;;  %vm551_vm3 = vcmask 588800   ;;  %s2103_s1 = inlined_call_operand.vmem [shape: bf16[140,144], index: 1, kind: input, shape index: {}]   ;;  %s2104_s0 = inlined_call_operand.vmem [shape: bf16[1,4,12,140], index: 0, kind: input, shape index: {}]   ;;  %s2105_s6 = inlined_call_operand.vmem [shape: f32[8,128], index: 6, kind: input, shape index: {}]   ;;  %s2106_s2 = inlined_call_operand.vmem [shape: bf16[360,128], index: 2, kind: input, shape index: {}]   ;;  %s2107_s3 = inlined_call_operand.vmem [shape: bf16[256,120], index: 3, kind: input, shape index: {}]   ;;  %s2108_s4 = inlined_call_operand.vmem [shape: bf16[120,84], index: 4, kind: input, shape index: {}]   ;;  %s2109_s5 = inlined_call_operand.vmem [shape: bf16[84,10], index: 5, kind: input, shape index: {}]   ;;  %s2110_s7 = inlined_call_operand.vmem [shape: f32[2,128], index: 7, kind: output, shape index: {}]  }
   0x1   :  { %v1220_v0 = vld [vmem:[%s2103_s1 + $0x70] sm:$0xf]  ;;  %v1491_v1 = vld [vmem:[%s2103_s1 + $0x74] sm:$0xf0]  ;;  %v1490_v2 = vld [vmem:[%s2103_s1 + $0x74] sm:$0xf] }
   0x2   :  { %v1625_v3 = vor.u32 %v1491_v1, %v1220_v0  ;;  %v1222_v4 = vld [vmem:[%s2103_s1 + $0x78] sm:$0xf0]  ;;  %v1228_v5 = vld [vmem:[%s2103_s1 + $0x80] sm:$0xf]  ;;  %v1493_v6 = vld [vmem:[%s2103_s1 + $0x84] sm:$0x30] }
   0x3   :  { %v1636_v7 = vor.u32 %v1490_v2, %v1222_v4  ;;  %v1229_v8 = vor.u32 %v1493_v6, %v1228_v5  ;;  %v1212_v9 = vld [vmem:[%s2103_s1 + $0x60] sm:$0xf]  ;;  %v1489_v10 = vld [vmem:[%s2103_s1 + $0x64] sm:$0xf0]  ;;  %v1488_v11 = vld [vmem:[%s2103_s1 + $0x64] sm:$0xf] }
   0x4   :  { %156 = vmatpush.bf16.msra.mxu0 %v1625_v3  ;;  %v1648_v12 = vor.u32 %v1489_v10, %v1212_v9  ;;  %v1214_v13 = vld [vmem:[%s2103_s1 + $0x68] sm:$0xf0]  ;;  %v1492_v14 = vld [vmem:[%s2103_s1 + $0x84] sm:$0xf]  ;;  %v1204_v19 = vld [vmem:[%s2103_s1 + $0x50] sm:$0xf] }
   0x5   :  { %v1230_v15 = vld [vmem:[%s2103_s1 + $0x88] sm:$0x30]  ;;  %184 = vmatpush.bf16.msra.mxu2 %v1636_v7  ;;  %v1661_v16 = vsel %vm149_vm0, %v1229_v8, 0  ;;  %v1663_v17 = vor.u32 %v1488_v11, %v1214_v13  ;;  %v1487_v20 = vld [vmem:[%s2103_s1 + $0x54] sm:$0xf0]  ;;  %s1572_s29 = smov 32  }
   0x6   :  { %v1233_v18 = vor.u32 %v1492_v14, %v1230_v15  ;;  %177 = vmatpush.bf16.msra.mxu1 %v1661_v16  ;;  %v1486_v21 = vld [vmem:[%s2103_s1 + $0x54] sm:$0xf]  ;;  %v1206_v22 = vld [vmem:[%s2103_s1 + $0x58] sm:$0xf0]  ;;  %v1494_v23 = vld [vmem:[%s2104_s0 + $0x4] sm:$0xf]  ;;  %v1690_v26 = vor.u32 %v1487_v20, %v1204_v19 }
   0x7   :  { %v1158_v25 = vld [vmem:[%s2104_s0 + $0x8] sm:$0x30]  ;;  %v1693_v28 = vor.u32 %v1486_v21, %v1206_v22  ;;  %v1196_v29 = vld [vmem:[%s2103_s1 + $0x40] sm:$0xf]  ;;  %v1485_v30 = vld [vmem:[%s2103_s1 + $0x44] sm:$0xf0] }
   0x8   :  { %v1683_v24 = vsel %vm149_vm0, %v1233_v18, 0  ;;  %157 = vmatpush.bf16.msra.mxu0 %v1648_v12  ;;  %v1161_v27 = vor.u32 %v1494_v23, %v1158_v25  ;;  %v1484_v31 = vld [vmem:[%s2103_s1 + $0x44] sm:$0xf]  ;;  %v1198_v32 = vld [vmem:[%s2103_s1 + $0x48] sm:$0xf0]  ;;  %v1713_v33 = vor.u32 %v1485_v30, %v1196_v29  ;;  %s1573_s30 = smov 88  }
   0x9   :  { %205 = vmatpush.bf16.msra.mxu3 %v1683_v24  ;;  %185 = vmatpush.bf16.msra.mxu2 %v1663_v17  ;;  %v1716_v34 = vor.u32 %v1484_v31, %v1198_v32  ;;  %v1188_v35 = vld [vmem:[%s2103_s1 + $0x30] sm:$0xf]  ;;  %v1483_v36 = vld [vmem:[%s2103_s1 + $0x34] sm:$0xf0]  ;;  %v1482_v37 = vld [vmem:[%s2103_s1 + $0x34] sm:$0xf] }
   0xa   :  { %227 = vmatpush.bf16.msrb.mxu1 %v1625_v3  ;;  %v1190_v38 = vld [vmem:[%s2103_s1 + $0x38] sm:$0xf0]  ;;  %v1733_v39 = vor.u32 %v1483_v36, %v1188_v35  ;;  %v1180_v41 = vld [vmem:[%s2103_s1 + $0x20] sm:$0xf]  ;;  %v1481_v42 = vld [vmem:[%s2103_s1 + $0x24] sm:$0xf0] }
   0xb   :  { %1234 = vmatmul.msk.bf16.vlgmr.msra.gmra.mxu1 %vm145_vm1, %v1161_v27  ;;  %v1736_v40 = vor.u32 %v1482_v37, %v1190_v38  ;;  %v1480_v43 = vld [vmem:[%s2103_s1 + $0x24] sm:$0xf]  ;;  %v1182_v44 = vld [vmem:[%s2103_s1 + $0x28] sm:$0xf0]  ;;  %v1753_v45 = vor.u32 %v1481_v42, %v1180_v41  ;;  %v1172_v49 = vld [vmem:[%s2103_s1 + $0x10] sm:$0xf] }
   0xc   :  { %1235 = vmatmul.msk.bf16.vlgmr.msra.gmra.mxu3 %vm145_vm1, %v1161_v27  ;;  %158 = vmatpush.bf16.msra.mxu0 %v1690_v26  ;;  %v1496_v46 = vld [vmem:[%s2104_s0 + $0x24] sm:$0xf]  ;;  %v1242_v47 = vld [vmem:[%s2104_s0 + $0x28] sm:$0x30]  ;;  %v1762_v48 = vor.u32 %v1480_v43, %v1182_v44  ;;  %v1479_v50 = vld [vmem:[%s2103_s1 + $0x14] sm:$0xf0] }
   0xd   :  { %248 = vmatpush.bf16.msrb.mxu3 %v1661_v16  ;;  %186 = vmatpush.bf16.msra.mxu2 %v1693_v28  ;;  %v1478_v51 = vld [vmem:[%s2103_s1 + $0x14] sm:$0xf]  ;;  %v1174_v52 = vld [vmem:[%s2103_s1 + $0x18] sm:$0xf0]  ;;  %v1245_v53 = vor.u32 %v1496_v46, %v1242_v47  ;;  %v1779_v54 = vor.u32 %v1479_v50, %v1172_v49  ;;  %v1164_v56 = vld [vmem:[%s2103_s1] sm:$0xf] }
   0xe   :  { %228 = vmatpush.bf16.msrb.mxu1 %v1648_v12  ;;  %v1782_v55 = vor.u32 %v1478_v51, %v1174_v52  ;;  %v1477_v57 = vld [vmem:[%s2103_s1 + $0x4] sm:$0xf0]  ;;  %v1476_v58 = vld [vmem:[%s2103_s1 + $0x4] sm:$0xf]  ;;  %v1166_v59 = vld [vmem:[%s2103_s1 + $0x8] sm:$0xf0] }
   0xf   :  { %v1800_v60 = vor.u32 %v1477_v57, %v1164_v56  ;;  %v1156_v61 = vld [vmem:[%s2104_s0] sm:$0xf]  ;;  %v1495_v62 = vld [vmem:[%s2104_s0 + $0x4] sm:$0x30]  ;;  %v1809_v63 = vor.u32 %v1476_v58, %v1166_v59  ;;  %v1498_v5 = vld [vmem:[%s2104_s0 + $0x14] sm:$0xf] }
  0x10   :  { %159 = vmatpush.bf16.msra.mxu0 %v1713_v33  ;;  %v1157_v0 = vor.u32 %v1495_v62, %v1156_v61  ;;  %v1240_v1 = vld [vmem:[%s2104_s0 + $0x20] sm:$0xf]  ;;  %v1497_v2 = vld [vmem:[%s2104_s0 + $0x24] sm:$0x30]  ;;  %v1254_v6 = vld [vmem:[%s2104_s0 + $0x18] sm:$0x30] }
  0x11   :  { %255 = vmatpush.bf16.msra.mxu3 %v1636_v7  ;;  %187 = vmatpush.bf16.msra.mxu2 %v1716_v34  ;;  %v1241_v4 = vor.u32 %v1497_v2, %v1240_v1  ;;  %v1252_v8 = vld [vmem:[%s2104_s0 + $0x10] sm:$0xf]  ;;  %v1499_v9 = vld [vmem:[%s2104_s0 + $0x14] sm:$0x30]  ;;  %v1500_v13 = vld [vmem:[%s2104_s0 + $0x34] sm:$0xf] }
  0x12   :  { %229 = vmatpush.bf16.msrb.mxu1 %v1690_v26  ;;  %v1253_v10 = vor.u32 %v1499_v9, %v1252_v8  ;;  %v1501_v11 = vld [vmem:[%s2104_s0 + $0x34] sm:$0x30]  ;;  %v1266_v14 = vld [vmem:[%s2104_s0 + $0x38] sm:$0x30]  ;;  %vm704_vm4 = vcmask 1043456   ;;  %vm556_vm5 = vcmask 130048  }
  0x13   :  { %v1269_v15 = vor.u32 %v1500_v13, %v1266_v14  ;;  %vm559_vm6 = vcmask 719872   ;;  %vm563_vm7 = vcmask 261120   ;;  %vm701_vm8 = vcmask 850944  }
  0x14   :  { %160 = vmatpush.bf16.msra.mxu0 %v1733_v39  ;;  %vm828_vm9 = vcmask 523264   ;;  %vm1125_vm10 = vcmask 1041408   ;;  %vm1053_vm11 = vcmask 982016   ;;  %vm1121_vm12 = vcmask 687104  }
  0x15   :  { %256 = vmatpush.bf16.msra.mxu3 %v1663_v17  ;;  %188 = vmatpush.bf16.msra.mxu2 %v1736_v40  ;;  %vm1147_vm13 = vcmask 769024  }
  0x16   :  { %230 = vmatpush.bf16.msrb.mxu1 %v1713_v33 }
  0x18   :  { %161 = vmatpush.bf16.msra.mxu0 %v1753_v45 }
  0x19   :  { %257 = vmatpush.bf16.msra.mxu3 %v1693_v28  ;;  %189 = vmatpush.bf16.msra.mxu2 %v1762_v48 }
  0x1a   :  { %231 = vmatpush.bf16.msrb.mxu1 %v1733_v39 }
  0x1c   :  { %1246 = vmatmul.msk.bf16.vlgmr.msrb.gmra.mxu3 %vm145_vm1, %v1245_v53  ;;  %162 = vmatpush.bf16.msra.mxu0 %v1779_v54 }
  0x1d   :  { %258 = vmatpush.bf16.msra.mxu3 %v1716_v34  ;;  %190 = vmatpush.bf16.msra.mxu2 %v1782_v55 }
  0x1e   :  { %232 = vmatpush.bf16.msrb.mxu1 %v1753_v45 }
  0x20   :  { %163 = vmatpush.bf16.msra.mxu0 %v1800_v60 }
  0x21   :  { %259 = vmatpush.bf16.msra.mxu3 %v1736_v40  ;;  %191 = vmatpush.bf16.msra.mxu2 %v1809_v63 }
  0x22   :  { %233 = vmatpush.bf16.msrb.mxu1 %v1779_v54 }
  0x23   :  { %164 = vmatmul.bf16.vlgmr.msra.gmra.mxu0 %v1157_v0 }
  0x24   :  { %276 = vmatpush.bf16.msrb.mxu0 %v1683_v24  ;;  %192 = vmatmul.bf16.vlgmr.msra.gmra.mxu2 %v1157_v0 }
  0x25   :  { %260 = vmatpush.bf16.msra.mxu3 %v1762_v48  ;;  %328 = vmatpush.bf16.msrb.mxu2 %v1625_v3 }
  0x26   :  { %234 = vmatpush.bf16.msrb.mxu1 %v1800_v60 }
  0x28   :  { %356 = vmatpush.bf16.msra.mxu0 %v1636_v7 }
  0x29   :  { %261 = vmatpush.bf16.msra.mxu3 %v1782_v55  ;;  %235 = vmatmul.bf16.vlgmr.msrb.gmra.mxu1 %v1241_v4 }
  0x2a   :  { %349 = vmatpush.bf16.msra.mxu1 %v1661_v16  ;;  %329 = vmatpush.bf16.msrb.mxu2 %v1648_v12 }
  0x2c   :  { %357 = vmatpush.bf16.msra.mxu0 %v1663_v17 }
  0x2d   :  { %262 = vmatpush.bf16.msra.mxu3 %v1809_v63 }
  0x2e   :  { %377 = vmatpush.bf16.msrb.mxu1 %v1683_v24  ;;  %330 = vmatpush.bf16.msrb.mxu2 %v1690_v26 }
  0x30   :  { %358 = vmatpush.bf16.msra.mxu0 %v1693_v28  ;;  %263 = vmatmul.bf16.vlgmr.msra.gmra.mxu3 %v1241_v4 }
  0x31   :  { %399 = vmatpush.bf16.msrb.mxu3 %v1625_v3  ;;  %v1257_v3 = vor.u32 %v1498_v5, %v1254_v6 }
  0x32   :  { %331 = vmatpush.bf16.msrb.mxu2 %v1713_v33 }
  0x33   :  { %1247 = vmatmul.msk.bf16.vlgmr.msrb.gmra.mxu0 %vm145_vm1, %v1245_v53 }
  0x34   :  { %359 = vmatpush.bf16.msra.mxu0 %v1716_v34 }
  0x35   :  { %400 = vmatpush.bf16.msrb.mxu3 %v1648_v12 }
  0x36   :  { %332 = vmatpush.bf16.msrb.mxu2 %v1733_v39 }
  0x38   :  { %360 = vmatpush.bf16.msra.mxu0 %v1736_v40 }
  0x39   :  { %401 = vmatpush.bf16.msrb.mxu3 %v1690_v26  ;;  %1258 = vmatmul.msk.bf16.vlgmr.msra.gmra.mxu1 %vm145_vm1, %v1257_v3 }
  0x3a   :  { %333 = vmatpush.bf16.msrb.mxu2 %v1753_v45  ;;  %427 = vmatpush.bf16.msra.mxu1 %v1636_v7  ;;  %v1264_v7 = vld [vmem:[%s2104_s0 + $0x30] sm:$0xf]  ;;  %s1569_s0 = smov 56  }
  0x3b   :  { %v1265_v12 = vor.u32 %v1501_v11, %v1264_v7 }
  0x3c   :  { %361 = vmatpush.bf16.msra.mxu0 %v1762_v48 }
  0x3d   :  { %402 = vmatpush.bf16.msrb.mxu3 %v1713_v33 }
  0x3e   :  { %334 = vmatpush.bf16.msrb.mxu2 %v1779_v54  ;;  %428 = vmatpush.bf16.msra.mxu1 %v1663_v17 }
  0x40   :  { %362 = vmatpush.bf16.msra.mxu0 %v1782_v55 }
  0x41   :  { %403 = vmatpush.bf16.msrb.mxu3 %v1733_v39 }
  0x42   :  { %335 = vmatpush.bf16.msrb.mxu2 %v1800_v60  ;;  %429 = vmatpush.bf16.msra.mxu1 %v1693_v28 }
  0x44   :  { %363 = vmatpush.bf16.msra.mxu0 %v1809_v63 }
  0x45   :  { %404 = vmatpush.bf16.msrb.mxu3 %v1753_v45  ;;  %336 = vmatmul.bf16.vlgmr.msrb.gmra.mxu2 %v1253_v10 }
  0x46   :  { %430 = vmatpush.bf16.msra.mxu1 %v1716_v34 }
  0x47   :  { %364 = vmatmul.bf16.vlgmr.msra.gmra.mxu0 %v1253_v10 }
  0x48   :  { %420 = vmatpush.bf16.msrb.mxu0 %v1661_v16 }
  0x49   :  { %405 = vmatpush.bf16.msrb.mxu3 %v1779_v54  ;;  %1259 = vmatmul.msk.bf16.vlgmr.msrb.gmra.mxu1 %vm145_vm1, %v1257_v3 }
  0x4a   :  { %431 = vmatpush.bf16.msra.mxu1 %v1736_v40 }
  0x4c   :  { %448 = vmatpush.bf16.msra.mxu0 %v1683_v24 }
  0x4d   :  { %406 = vmatpush.bf16.msrb.mxu3 %v1800_v60 }
  0x4e   :  { %432 = vmatpush.bf16.msra.mxu1 %v1762_v48 }
  0x50   :  { %407 = vmatmul.bf16.vlgmr.msrb.gmra.mxu3 %v1265_v12 }
  0x52   :  { %433 = vmatpush.bf16.msra.mxu1 %v1782_v55 }
  0x56   :  { %434 = vmatpush.bf16.msra.mxu1 %v1809_v63 }
  0x57   :  { %1270 = vmatmul.msk.bf16.vlgmr.msrb.gmra.mxu0 %vm145_vm1, %v1269_v15 }
  0x59   :  { %435 = vmatmul.bf16.vlgmr.msra.gmra.mxu1 %v1265_v12  ;;  %v1564_v12 = vld [vmem:[%s2105_s6] ss:$0 sm:$0xff] }
  0x67   :  { %1271 = vmatmul.msk.bf16.vlgmr.msra.gmra.mxu0 %vm145_vm1, %v1269_v15 }
  0x88   :  { %v179_v17 = vpop.f32.mrf.mxu1 }
  0x8f   :  { %v207_v16 = vpop.f32.mrf.mxu3 }
  0x90   :  { %v181_v19 = vpop.f32.mrf.mxu1 }
  0x97   :  { %v209_v18 = vpop.f32.mrf.mxu3 }
  0x9f   :  { %v250_v20 = vpop.f32.mrf.mxu3 }
  0xa0   :  { %v165_v21 = vpop.f32.mrf.mxu0 }
  0xa1   :  { %v180_v23 = vadd.f32 %v179_v17, %v165_v21 }
  0xa6   :  { %v236_v22 = vpop.f32.mrf.mxu1 }
  0xa7   :  { %v251_v24 = vadd.f32 %v250_v20, %v236_v22  ;;  %v252_v26 = vpop.f32.mrf.mxu3  ;;  %v193_v29 = vpop.f32.mrf.mxu2 }
  0xa8   :  { %v167_v27 = vpop.f32.mrf.mxu0  ;;  %v208_v35 = vadd.f32 %v207_v16, %v193_v29 }
  0xa9   :  { %v1890_v25 = vmax.f32 %v180_v23, %v251_v24  ;;  %v182_v30 = vadd.f32 %v181_v19, %v167_v27 }
  0xab   :  { %291 = vrot.lane.b32.xlu0 %v1890_v25, %s1569_s0 }
  0xae   :  { %v238_v28 = vpop.f32.mrf.mxu1 }
  0xaf   :  { %v253_v31 = vadd.f32 %v252_v26, %v238_v28  ;;  %v195_v38 = vpop.f32.mrf.mxu2 }
  0xb0   :  { %v278_v34 = vpop.f32.mrf.mxu0  ;;  %v210_v42 = vadd.f32 %v209_v18, %v195_v38  ;;  %v1507_v38 = vld [vmem:[%s2106_s2 + $0x28] sm:$0xff] }
  0xb1   :  { %v285_v32 = vmax.f32 %v182_v30, %v253_v31 }
  0xb3   :  { %v264_v33 = vpop.f32.mrf.mxu3  ;;  %295 = vrot.lane.b32.xlu1 %v285_v32, %s1569_s0 }
  0xb4   :  { %v279_v36 = vadd.f32 %v278_v34, %v264_v33 }
  0xb6   :  { %v284_v37 = vmax.f32 %v208_v35, %v279_v36  ;;  %v351_v39 = vpop.f32.mrf.mxu1  ;;  %v1509_v36 = vld [vmem:[%s2106_s2 + $0x38] sm:$0xff] }
  0xb7   :  { %708 = vmatpush.bf16.msra.mxu2 %v1509_v36  ;;  %769 = vmatpush.bf16.msrb.mxu1 %v1509_v36 }
  0xb8   :  { %293 = vrot.lane.b32.xlu0 %v284_v37, %s1569_s0  ;;  %v280_v41 = vpop.f32.mrf.mxu0  ;;  %v1508_v37 = vld [vmem:[%s2106_s2 + $0x30] sm:$0xff] }
  0xbb   :  { %v266_v40 = vpop.f32.mrf.mxu3  ;;  %709 = vmatpush.bf16.msra.mxu2 %v1508_v37  ;;  %770 = vmatpush.bf16.msrb.mxu1 %v1508_v37 }
  0xbc   :  { %v281_v43 = vadd.f32 %v280_v41, %v266_v40 }
  0xbe   :  { %v286_v44 = vmax.f32 %v210_v42, %v281_v43  ;;  %v353_v46 = vpop.f32.mrf.mxu1  ;;  %v1506_v43 = vld [vmem:[%s2106_s2 + $0x20] sm:$0xff] }
  0xbf   :  { %710 = vmatpush.bf16.msra.mxu2 %v1507_v38  ;;  %771 = vmatpush.bf16.msrb.mxu1 %v1507_v38 }
  0xc0   :  { %297 = vrot.lane.b32.xlu1 %v286_v44, %s1569_s0 }
  0xc3   :  { %711 = vmatpush.bf16.msra.mxu2 %v1506_v43  ;;  %772 = vmatpush.bf16.msrb.mxu1 %v1506_v43  ;;  %v1531_v43 = vld [vmem:[%s2107_s3 + $0x38] sm:$0xff] }
  0xc4   :  { %v365_v45 = vpop.f32.mrf.mxu0 }
  0xc6   :  { %v379_v48 = vpop.f32.mrf.mxu1 }
  0xc7   :  { %v380_v0 = vadd.f32 %v379_v48, %v365_v45 }
  0xc8   :  { %v337_v49 = vpop.f32.mrf.mxu2 }
  0xc9   :  { %v352_v52 = vadd.f32 %v351_v39, %v337_v49  ;;  %v1504_v49 = vld [vmem:[%s2106_s2 + $0x10] sm:$0xff] }
  0xcc   :  { %v367_v47 = vpop.f32.mrf.mxu0 }
  0xce   :  { %v381_v55 = vpop.f32.mrf.mxu1 }
  0xcf   :  { %v382_v6 = vadd.f32 %v381_v55, %v367_v47 }
  0xd0   :  { %v339_v56 = vpop.f32.mrf.mxu2 }
  0xd1   :  { %v354_v59 = vadd.f32 %v353_v46, %v339_v56  ;;  %v1505_v46 = vld [vmem:[%s2106_s2 + $0x18] sm:$0xff] }
  0xd2   :  { %712 = vmatpush.bf16.msra.mxu2 %v1505_v46  ;;  %773 = vmatpush.bf16.msrb.mxu1 %v1505_v46  ;;  %v1517_v56 = vld [vmem:[%s2106_s2 + $0x78] sm:$0xff]  ;;  %v1538_v46 = vld [vmem:[%s2107_s3 + $0x70] sm:$0xff] }
  0xd3   :  { %v408_v50 = vpop.f32.mrf.mxu3  ;;  %721 = vmatpush.bf16.msra.mxu3 %v1517_v56 }
  0xd4   :  { %v422_v51 = vpop.f32.mrf.mxu0 }
  0xd5   :  { %v423_v53 = vadd.f32 %v422_v51, %v408_v50 }
  0xd6   :  { %v436_v62 = vpop.f32.mrf.mxu1  ;;  %713 = vmatpush.bf16.msra.mxu2 %v1504_v49  ;;  %774 = vmatpush.bf16.msrb.mxu1 %v1504_v49  ;;  %v1528_v49 = vld [vmem:[%s2107_s3 + $0x20] sm:$0xff] }
  0xd7   :  { %v455_v54 = vmax.f32 %v352_v52, %v423_v53  ;;  %v1503_v53 = vld [vmem:[%s2106_s2 + $0x8] sm:$0xff] }
  0xd9   :  { %463 = vrot.lane.b32.xlu2 %v455_v54, %s1569_s0 }
  0xda   :  { %714 = vmatpush.bf16.msra.mxu2 %v1503_v53  ;;  %775 = vmatpush.bf16.msrb.mxu1 %v1503_v53  ;;  %v1526_v53 = vld [vmem:[%s2107_s3 + $0x10] sm:$0xff] }
  0xdb   :  { %v410_v57 = vpop.f32.mrf.mxu3 }
  0xdc   :  { %v424_v58 = vpop.f32.mrf.mxu0 }
  0xdd   :  { %v425_v60 = vadd.f32 %v424_v58, %v410_v57  ;;  %v1516_v57 = vld [vmem:[%s2106_s2 + $0x70] sm:$0xff]  ;;  %v1515_v58 = vld [vmem:[%s2106_s2 + $0x68] sm:$0xff] }
  0xde   :  { %v438_v4 = vpop.f32.mrf.mxu1  ;;  %722 = vmatpush.bf16.msra.mxu3 %v1516_v57 }
  0xdf   :  { %v1898_v61 = vmax.f32 %v354_v59, %v425_v60  ;;  %v1514_v59 = vld [vmem:[%s2106_s2 + $0x60] sm:$0xff] }
  0xe1   :  { %467 = vrot.lane.b32.xlu0 %v1898_v61, %s1569_s0 }
  0xe2   :  { %723 = vmatpush.bf16.msra.mxu3 %v1515_v58 }
  0xe4   :  { %v450_v63 = vpop.f32.mrf.mxu0 }
  0xe5   :  { %v451_v1 = vadd.f32 %v450_v63, %v436_v62  ;;  %v1513_v62 = vld [vmem:[%s2106_s2 + $0x58] sm:$0xff]  ;;  %v527_v63 = vld [vmem:[%s2106_s2 + $0xb0] sm:$0xf] }
  0xe6   :  { %724 = vmatpush.bf16.msra.mxu3 %v1514_v59 }
  0xe7   :  { %v456_v2 = vmax.f32 %v380_v0, %v451_v1  ;;  %v655_v0 = vunpack.c.l.b16 %v527_v63  ;;  %v1512_v1 = vld [vmem:[%s2106_s2 + $0x50] sm:$0xff] }
  0xe9   :  { %465 = vrot.lane.b32.xlu2 %v456_v2, %s1569_s0  ;;  %v678_v2 = vpack.c.b16 %v655_v0, %v655_v0 }
  0xea   :  { %725 = vmatpush.bf16.msra.mxu3 %v1513_v62 }
  0xec   :  { %v452_v5 = vpop.f32.mrf.mxu0 }
  0xed   :  { %v453_v3 = vadd.f32 %v452_v5, %v438_v4  ;;  %v706_v4 = vsel %vm704_vm4, %v678_v2, 0  ;;  %v1532_v2 = vld [vmem:[%s2107_s3 + $0x40] sm:$0xff] }
  0xee   :  { %726 = vmatpush.bf16.msra.mxu3 %v1512_v1  ;;  %735 = vmatpush.bf16.msrb.mxu0 %v706_v4 }
  0xef   :  { %v458_v8 = vmax.f32 %v382_v6, %v453_v3  ;;  %v1511_v6 = vld [vmem:[%s2106_s2 + $0x48] sm:$0xff] }
  0xf0   :  { %v1523_v3 = vld [vmem:[%s2106_s2 + $0xa8] sm:$0xff] }
  0xf1   :  { %469 = vrot.lane.b32.xlu1 %v458_v8, %s1569_s0 }
  0xf2   :  { %727 = vmatpush.bf16.msra.mxu3 %v1511_v6  ;;  %736 = vmatpush.bf16.msrb.mxu0 %v1523_v3 }
 0x11d   :  { %v292_v9 = vpop.permute.xlu0 %291 }
 0x125   :  { %v296_v10 = vpop.permute.xlu1 %295 }
 0x12a   :  { %v294_v7 = vpop.permute.xlu0 %293 }
 0x12b   :  { %v300_v11 = vsel %vm299_vm2, %v292_v9, %v294_v7  ;;  %v1510_v9 = vld [vmem:[%s2106_s2 + $0x40] sm:$0xff]  ;;  %v1521_v7 = vld [vmem:[%s2106_s2 + $0x98] sm:$0xff] }
 0x12c   :  { %v304_v13 = vmax.f32 %v1890_v25, %v300_v11  ;;  %728 = vmatpush.bf16.msra.mxu3 %v1510_v9  ;;  %v1520_v11 = vld [vmem:[%s2106_s2 + $0x90] sm:$0xff] }
 0x12e   :  { %v307_v14 = vadd.f32 %v1564_v12, %v304_v13  ;;  %v1518_v13 = vld [vmem:[%s2106_s2 + $0x80] sm:$0xff] }
 0x130   :  { %v309_v17 = vmax.f32 %v307_v14, 0.0  ;;  %796 = vmatpush.bf16.msrb.mxu3 %v706_v4  ;;  %v1005_v4 = vld [vmem:[%s2108_s4 + $0x38] sm:$0xf] }
 0x132   :  { %v298_v15 = vpop.permute.xlu1 %297  ;;  %v1910_v20 = vpack.c.bf16 %v309_v17, %v309_v17 }
 0x133   :  { %v301_v16 = vsel %vm299_vm2, %v296_v10, %v298_v15  ;;  %v464_v22 = vpop.permute.xlu2 %463  ;;  %v1522_v10 = vld [vmem:[%s2106_s2 + $0xa0] sm:$0xff] }
 0x134   :  { %v305_v18 = vmax.f32 %v285_v32, %v301_v16  ;;  %v536_v24 = vunpack.c.l.b16 %v1910_v20  ;;  %737 = vmatpush.bf16.msrb.mxu0 %v1522_v10  ;;  %797 = vmatpush.bf16.msrb.mxu3 %v1523_v3 }
 0x136   :  { %v308_v19 = vadd.f32 %v1564_v12, %v305_v18 }
 0x138   :  { %v310_v21 = vmax.f32 %v308_v19, 0.0  ;;  %738 = vmatpush.bf16.msrb.mxu0 %v1521_v7  ;;  %798 = vmatpush.bf16.msrb.mxu3 %v1522_v10  ;;  %v1544_v10 = vld [vmem:[%s2108_s4 + $0x20] sm:$0xff] }
 0x13a   :  { %v312_v23 = vpack.c.bf16 %v310_v21, %v310_v21 }
 0x13c   :  { %v537_v26 = vunpack.c.l.b16 %v312_v23  ;;  %739 = vmatpush.bf16.msrb.mxu0 %v1520_v11  ;;  %799 = vmatpush.bf16.msrb.mxu3 %v1521_v7  ;;  %v1543_v7 = vld [vmem:[%s2108_s4 + $0x18] sm:$0xff] }
 0x13e   :  { %v538_v27 = vpack.c.b16 %v537_v26, %v536_v24 }
 0x140   :  { %v539_v28 = vrot.slane %v538_v27, 1  ;;  %v548_v55 = vrot.slane %v538_v27, 2  ;;  %800 = vmatpush.bf16.msrb.mxu3 %v1520_v11  ;;  %v1542_v11 = vld [vmem:[%s2108_s4 + $0x10] sm:$0xff] }
 0x142   :  { %540 = vrot.lane.b32.xlu0 %v539_v28, %s1570_s14 }
 0x143   :  { %v466_v29 = vpop.permute.xlu2 %465 }
 0x144   :  { %v471_v25 = vsel %vm299_vm2, %v464_v22, %v466_v29 }
 0x145   :  { %v475_v30 = vmax.f32 %v455_v54, %v471_v25  ;;  %v1502_v54 = vld [vmem:[%s2106_s2] sm:$0xff] }
 0x146   :  { %715 = vmatpush.bf16.msra.mxu2 %v1502_v54  ;;  %776 = vmatpush.bf16.msrb.mxu1 %v1502_v54  ;;  %v1534_v54 = vld [vmem:[%s2107_s3 + $0x50] sm:$0xff] }
 0x147   :  { %v477_v31 = vadd.f32 %v1564_v12, %v475_v30 }
 0x149   :  { %v479_v32 = vmax.f32 %v477_v31, 0.0 }
 0x14a   :  { %782 = vmatpush.bf16.msrb.mxu2 %v1517_v56 }
 0x14b   :  { %v1915_v33 = vpack.c.bf16 %v479_v32, %v479_v32 }
 0x14d   :  { %v530_v34 = vunpack.c.l.b16 %v1915_v33 }
 0x14e   :  { %783 = vmatpush.bf16.msrb.mxu2 %v1516_v57 }
 0x14f   :  { %v531_v35 = vpack.c.b16 %v530_v34, %v530_v34 }
 0x151   :  { %532 = vrot.lane.b32.xlu2 %v531_v35, %s1571_s15 }
 0x152   :  { %784 = vmatpush.bf16.msrb.mxu2 %v1515_v58  ;;  %v1525_v58 = vld [vmem:[%s2107_s3 + $0x8] sm:$0xff] }
 0x153   :  { %v468_v39 = vpop.permute.xlu0 %467 }
 0x156   :  { %785 = vmatpush.bf16.msrb.mxu2 %v1514_v59  ;;  %v1533_v59 = vld [vmem:[%s2107_s3 + $0x48] sm:$0xff] }
 0x159   :  { %747 = vrot.lane.b32.xlu2 %v539_v28, %s1571_s15 }
 0x15a   :  { %786 = vmatpush.bf16.msrb.mxu2 %v1513_v62 }
 0x15e   :  { %787 = vmatpush.bf16.msrb.mxu2 %v1512_v1  ;;  %v1524_v1 = vld [vmem:[%s2107_s3] sm:$0xff] }
 0x162   :  { %788 = vmatpush.bf16.msrb.mxu2 %v1511_v6 }
 0x163   :  { %v470_v40 = vpop.permute.xlu1 %469 }
 0x164   :  { %v472_v41 = vsel %vm299_vm2, %v468_v39, %v470_v40 }
 0x165   :  { %v476_v42 = vmax.f32 %v1898_v61, %v472_v41 }
 0x166   :  { %789 = vmatpush.bf16.msrb.mxu2 %v1510_v9  ;;  %v1545_v9 = vld [vmem:[%s2108_s4 + $0x28] sm:$0xff] }
 0x167   :  { %v478_v44 = vadd.f32 %v1564_v12, %v476_v42  ;;  %v1519_v12 = vld [vmem:[%s2106_s2 + $0x88] sm:$0xff]  ;;  %s1574_s2 = smov 64  }
 0x168   :  { %740 = vmatpush.bf16.msrb.mxu0 %v1519_v12  ;;  %801 = vmatpush.bf16.msrb.mxu3 %v1519_v12 }
 0x169   :  { %v480_v45 = vmax.f32 %v478_v44, 0.0  ;;  %v1539_v44 = vld [vmem:[%s2107_s3 + $0x78] sm:$0xff] }
 0x16a   :  { %976 = vmatpush.bf16.msra.mxu1 %v1539_v44 }
 0x16b   :  { %v482_v47 = vpack.c.bf16 %v480_v45, %v480_v45  ;;  %v1530_v45 = vld [vmem:[%s2107_s3 + $0x30] sm:$0xff] }
 0x16c   :  { %741 = vmatpush.bf16.msrb.mxu0 %v1518_v13  ;;  %802 = vmatpush.bf16.msrb.mxu3 %v1518_v13 }
 0x16d   :  { %v543_v48 = vunpack.c.l.b16 %v482_v47  ;;  %v1529_v47 = vld [vmem:[%s2107_s3 + $0x28] sm:$0xff] }
 0x16e   :  { %977 = vmatpush.bf16.msra.mxu1 %v1538_v46  ;;  %v1568_v46 = vld [vmem:[%s2105_s6 + $0x4] ss:$0 sm:$0xff] }
 0x16f   :  { %v544_v50 = vpack.c.b16 %v543_v48, %v530_v34  ;;  %v1537_v48 = vld [vmem:[%s2107_s3 + $0x68] sm:$0xff] }
 0x170   :  { %963 = vmatpush.bf16.msra.mxu0 %v1531_v43 }
 0x171   :  { %v753_v51 = vrot.slane %v544_v50, 2  ;;  %v545_v52 = vrot.slane %v544_v50, 1  ;;  %v1536_v50 = vld [vmem:[%s2107_s3 + $0x60] sm:$0xff] }
 0x172   :  { %978 = vmatpush.bf16.msra.mxu1 %v1537_v48 }
 0x173   :  { %754 = vrot.lane.b32.xlu2 %v753_v51, %s1572_s29  ;;  %749 = vrot.lane.b32.xlu0 %v545_v52, %s1570_s14  ;;  %v1527_v51 = vld [vmem:[%s2107_s3 + $0x18] sm:$0xff] }
 0x174   :  { %546 = vrot.lane.b32.xlu1 %v545_v52, %s1573_s30  ;;  %964 = vmatpush.bf16.msra.mxu0 %v1530_v45  ;;  %v1535_v52 = vld [vmem:[%s2107_s3 + $0x58] sm:$0xff]  ;;  %s1575_s3 = smov 84  }
 0x176   :  { %979 = vmatpush.bf16.msra.mxu1 %v1536_v50 }
 0x178   :  { %965 = vmatpush.bf16.msra.mxu0 %v1529_v47 }
 0x17a   :  { %980 = vmatpush.bf16.msra.mxu1 %v1535_v52 }
 0x17b   :  { %549 = vrot.lane.b32.xlu0 %v548_v55, %s1572_s29 }
 0x17c   :  { %751 = vrot.lane.b32.xlu1 %v548_v55, %s1573_s30  ;;  %966 = vmatpush.bf16.msra.mxu0 %v1528_v49  ;;  %v1565_v55 = vld [vmem:[%s2105_s6 + $0x1] ss:$0 sm:$0xff] }
 0x17e   :  { %981 = vmatpush.bf16.msra.mxu1 %v1534_v54 }
 0x180   :  { %967 = vmatpush.bf16.msra.mxu0 %v1527_v51 }
 0x182   :  { %982 = vmatpush.bf16.msra.mxu1 %v1533_v59 }
 0x184   :  { %968 = vmatpush.bf16.msra.mxu0 %v1526_v53 }
 0x186   :  { %983 = vmatpush.bf16.msra.mxu1 %v1532_v2 }
 0x188   :  { %969 = vmatpush.bf16.msra.mxu0 %v1525_v58 }
 0x18c   :  { %970 = vmatpush.bf16.msra.mxu0 %v1524_v1 }
 0x1ab   :  { %v533_v60 = vpop.permute.xlu2 %532 }
 0x1ac   :  { %v554_v61 = vsel %vm551_vm3, %v1910_v20, %v533_v60 }
 0x1ad   :  { %716 = vmatmul.bf16.vlgmr.msra.gmra.mxu2 %v554_v61 }
 0x1b3   :  { %v748_v5 = vpop.permute.xlu2 %747 }
 0x1b4   :  { %v758_v8 = vsel %vm551_vm3, %v1915_v33, %v748_v5  ;;  %v541_v14 = vpop.permute.xlu0 %540 }
 0x1b5   :  { %777 = vmatmul.bf16.vlgmr.msrb.gmra.mxu1 %v758_v8  ;;  %v558_v16 = vsel %vm556_vm5, %v533_v60, %v541_v14  ;;  %v1546_v8 = vld [vmem:[%s2108_s4 + $0x30] sm:$0xff] }
 0x1cd   :  { %v755_v24 = vpop.permute.xlu2 %754 }
 0x1e5   :  { %v750_v15 = vpop.permute.xlu0 %749 }
 0x1e6   :  { %v547_v17 = vpop.permute.xlu1 %546  ;;  %v761_v20 = vsel %vm556_vm5, %v748_v5, %v750_v15  ;;  %v1037_v5 = vunpack.c.l.b16 %v1005_v4 }
 0x1e7   :  { %v561_v18 = vsel %vm559_vm6, %v558_v16, %v547_v17 }
 0x1e8   :  { %729 = vmatmul.bf16.vlgmr.msra.gmra.mxu3 %v561_v18  ;;  %v1045_v6 = vpack.c.b16 %v1037_v5, %v1037_v5 }
 0x1ea   :  { %v1058_v3 = vsel %vm704_vm4, %v1045_v6, 0 }
 0x1eb   :  { %1060 = vmatpush.bf16.msra.mxu2 %v1058_v3 }
 0x1ed   :  { %v550_v19 = vpop.permute.xlu0 %549 }
 0x1ee   :  { %v752_v21 = vpop.permute.xlu1 %751  ;;  %v565_v22 = vsel %vm563_vm7, %v547_v17, %v550_v19 }
 0x1ef   :  { %v763_v23 = vsel %vm559_vm6, %v761_v20, %v752_v21  ;;  %1360 = vmatmul.msk.bf16.vlgmr.msrb.gmra.mxu0 %vm701_vm8, %v565_v22  ;;  %v766_v26 = vsel %vm563_vm7, %v752_v21, %v755_v24  ;;  %1061 = vmatpush.bf16.msra.mxu2 %v1546_v8  ;;  %v1541_v20 = vld [vmem:[%s2108_s4 + $0x8] sm:$0xff]  ;;  %v1540_v21 = vld [vmem:[%s2108_s4] sm:$0xff] }
 0x1f0   :  { %790 = vmatmul.bf16.vlgmr.msrb.gmra.mxu2 %v763_v23  ;;  %v1085_v22 = vld [vmem:[%s2109_s5 + $0x28] sm:$0x3] }
 0x1f1   :  { %v1109_v23 = vunpack.c.l.b16 %v1085_v22 }
 0x1f3   :  { %1062 = vmatpush.bf16.msra.mxu2 %v1545_v9  ;;  %v1115_v24 = vpack.c.b16 %v1109_v23, %v1109_v23 }
 0x1f7   :  { %1063 = vmatpush.bf16.msra.mxu2 %v1544_v10 }
 0x1f8   :  { %1361 = vmatmul.msk.bf16.vlgmr.msrb.gmra.mxu3 %vm701_vm8, %v766_v26  ;;  %v1127_v26 = vsel %vm1125_vm10, %v1115_v24, 0 }
 0x1f9   :  { %1131 = vmatpush.bf16.msra.mxu3 %v1127_v26 }
 0x1fb   :  { %1064 = vmatpush.bf16.msra.mxu2 %v1543_v7 }
 0x1ff   :  { %1065 = vmatpush.bf16.msra.mxu2 %v1542_v11 }
 0x203   :  { %1066 = vmatpush.bf16.msra.mxu2 %v1541_v20 }
 0x207   :  { %1067 = vmatpush.bf16.msra.mxu2 %v1540_v21 }
 0x230   :  { %v717_v27 = vpop.f32.mrf.mxu2 }
 0x232   :  { %v778_v28 = vpop.f32.mrf.mxu1 }
 0x238   :  { %v719_v29 = vpop.f32.mrf.mxu2 }
 0x239   :  { %v1549_v29 = vld [vmem:[%s2109_s5 + $0x10] sm:$0xff] }
 0x23a   :  { %v780_v25 = vpop.f32.mrf.mxu1 }
 0x23b   :  { %v1566_v25 = vld [vmem:[%s2105_s6 + $0x2] ss:$0 sm:$0xff] }
 0x26b   :  { %v730_v30 = vpop.f32.mrf.mxu3 }
 0x26c   :  { %v743_v31 = vpop.f32.mrf.mxu0  ;;  %v731_v35 = vadd.f32 %v730_v30, %v717_v27  ;;  %v1551_v27 = vld [vmem:[%s2109_s5 + $0x20] sm:$0xff] }
 0x26d   :  { %1132 = vmatpush.bf16.msra.mxu3 %v1551_v27 }
 0x26e   :  { %v744_v39 = vadd.f32 %v743_v31, %v731_v35 }
 0x273   :  { %v732_v32 = vpop.f32.mrf.mxu3  ;;  %v791_v33 = vpop.f32.mrf.mxu2 }
 0x274   :  { %v745_v34 = vpop.f32.mrf.mxu0  ;;  %v792_v36 = vadd.f32 %v791_v33, %v778_v28  ;;  %v1550_v28 = vld [vmem:[%s2109_s5 + $0x18] sm:$0xff] }
 0x275   :  { %1133 = vmatpush.bf16.msra.mxu3 %v1550_v28 }
 0x279   :  { %1134 = vmatpush.bf16.msra.mxu3 %v1549_v29 }
 0x27b   :  { %v793_v37 = vpop.f32.mrf.mxu2  ;;  %v804_v38 = vpop.f32.mrf.mxu3 }
 0x27c   :  { %v805_v40 = vadd.f32 %v804_v38, %v792_v36  ;;  %v1548_v38 = vld [vmem:[%s2109_s5 + $0x8] sm:$0xff] }
 0x27d   :  { %1135 = vmatpush.bf16.msra.mxu3 %v1548_v38 }
 0x27e   :  { %v808_v41 = vmax.f32 %v744_v39, %v805_v40  ;;  %v1547_v39 = vld [vmem:[%s2109_s5] sm:$0xff] }
 0x27f   :  { %v1567_v40 = vld [vmem:[%s2105_s6 + $0x3] ss:$0 sm:$0xff] }
 0x280   :  { %810 = vrot.lane.b32.xlu1 %v808_v41, %s1574_s2 }
 0x281   :  { %1136 = vmatpush.bf16.msra.mxu3 %v1547_v39 }
 0x283   :  { %v806_v42 = vpop.f32.mrf.mxu3 }
 0x2f2   :  { %v811_v56 = vpop.permute.xlu1 %810 }
 0x2f3   :  { %v813_v57 = vmax.f32 %v808_v41, %v811_v56 }
 0x2f5   :  { %v815_v60 = vadd.f32 %v1565_v55, %v813_v57 }
 0x2f7   :  { %v816_v61 = vmax.f32 %v815_v60, 0.0 }
 0x2f9   :  { %v818_v62 = vrot.slane %v816_v61, 2  ;;  %v824_v63 = vrot.slane %v816_v61, 6  ;;  %v822_v13 = vrot.slane %v816_v61, 4 }
 0x2fb   :  { %v1559_v0 = vpack.i.bf16 %v824_v63, %v818_v62 }
 0x2fd   :  { %1560 = vrot.lane.b32.xlu2 %v1559_v0, %s1574_s2 }
 0x357   :  { %v1561_v12 = vpop.permute.xlu2 %1560 }
 0x358   :  { %v1563_v14 = vunpack.i.h.bf16 %v1561_v12  ;;  %v1562_v15 = vunpack.i.l.bf16 %v1561_v12 }
 0x35a   :  { %v830_v16 = vsel %vm828_vm9, %v822_v13, %v1563_v14  ;;  %v829_v17 = vsel %vm828_vm9, %v816_v61, %v1562_v15 }
 0x35b   :  { %v832_v18 = vpack.c.bf16 %v830_v16, %v830_v16  ;;  %v831_v19 = vpack.c.bf16 %v829_v17, %v829_v17 }
 0x35d   :  { %971 = vmatmul.bf16.vlgmr.msra.gmra.mxu0 %v831_v19  ;;  %984 = vmatmul.bf16.vlgmr.msra.gmra.mxu1 %v832_v18 }
 0x3da   :  { %v972_v30 = vpop.f32.mrf.mxu0  ;;  %v985_v31 = vpop.f32.mrf.mxu1 }
 0x3db   :  { %v973_v32 = vadd.f32 %v1566_v25, %v972_v30 }
 0x3dd   :  { %v986_v33 = vadd.f32 %v985_v31, %v973_v32 }
 0x3df   :  { %v989_v34 = vmax.f32 %v986_v33, 0.0 }
 0x3e1   :  { %v990_v35 = vpack.c.bf16 %v989_v34, %v989_v34 }
 0x3e2   :  { %v974_v36 = vpop.f32.mrf.mxu0  ;;  %v987_v37 = vpop.f32.mrf.mxu1 }
 0x3e3   :  { %1454 = vmatmul.msk.bf16.vlgmr.msra.gmra.mxu2 %vm1053_vm11, %v990_v35 }
 0x466   :  { %v1069_v41 = vpop.f32.mrf.mxu2 }
 0x467   :  { %v1070_v42 = vadd.f32 %v1567_v40, %v1069_v41 }
 0x469   :  { %v1073_v43 = vmax.f32 %v1070_v42, 0.0 }
 0x46b   :  { %v1074_v44 = vpack.c.bf16 %v1073_v43, %v1073_v43 }
 0x46d   :  { %1475 = vmatmul.msk.bf16.vlgmr.msra.gmra.mxu3 %vm1121_vm12, %v1074_v44 }
 0x46e   :  { %v1071_v45 = vpop.f32.mrf.mxu2 }
 0x4f0   :  { %v1138_v47 = vpop.f32.mrf.mxu3 }
 0x4f1   :  { %v1139_v48 = vadd.f32 %v1568_v46, %v1138_v47 }
 0x4f3   :  { %1143 = vrot.lane.b32.xlu0 %v1139_v48, %s1575_s3 }
 0x4f8   :  { %v1140_v49 = vpop.f32.mrf.mxu3 }
 0x565   :  { %v1144_v50 = vpop.permute.xlu0 %1143 }
 0x566   :  { %v1146_v51 = vsel %vm1121_vm12, %v1073_v43, %v1144_v50 }
 0x567   :  { %v1148_v52 = vsel %vm1147_vm13, %v1146_v51, 0.0 }
 0x568   :  { %1149 = vst [vmem:[%s2110_s7] sm:$0x3] %v1148_v52 }

</bundles_post_ra>
